<compile_context>
chip_gen: v5e
topology: v5e:2x2
jax: 0.10.0
libtpu: 0.0.40
codegen_flags: <defaults>
</compile_context>

<pallas_src>
import functools

import jax
import jax.numpy as jnp
from jax.experimental import pallas as pl
from jax.experimental.pallas import tpu as pltpu

LANE = 128  # TPU lane width (same on v5e/v6e/v7x)


def _round_up(n, m):
    return ((n + m - 1) // m) * m


def _fused_mlp_kernel(*refs, num_linear: int):
    """refs = (x_ref, w0, b0, w1, b1, ..., w_{n-1}, b_{n-1}, o_ref).

    Whole forward pass in one kernel body: bf16-operand matmuls on the MXU with f32
    accumulation, bias add + ReLU in f32 on the VPU; activations never leave
    VMEM/vregs between layers and every feature dim is a multiple of 128 lanes.
    """
    x_ref = refs[0]
    o_ref = refs[-1]
    wb_refs = refs[1:-1]

    h = x_ref[...].astype(jnp.float32)
    for i in range(num_linear):
        w = wb_refs[2 * i][...]                               # (Din_p, Dout_p), bf16
        b = wb_refs[2 * i + 1][...].astype(jnp.float32)       # (1, Dout_p) broadcast row
        h = jnp.dot(h.astype(w.dtype), w, preferred_element_type=jnp.float32) + b
        if i < num_linear - 1:                                # final Linear has no ReLU
            h = jnp.maximum(h, 0.0)
    o_ref[...] = h.astype(o_ref.dtype)


def example_model_forward(x, params, *, max_batch_block: int = 2048,
                          matmul_dtype=jnp.bfloat16):
    """Fused (Linear+ReLU)*num_layers + final Linear.  x: (B, Din) float32."""
    B, Din = x.shape
    num_linear = len(params)
    out_dim = params[-1][0].shape[1]

    # ---- lane-dense padding: every feature dim -> multiple of 128, done once in XLA ----
    din_p = _round_up(Din, LANE)
    out_p = _round_up(out_dim, LANE)
    x_p = jnp.pad(x, ((0, 0), (0, din_p - Din)))

    flat_wb = []
    for w, b in params:
        di, do = w.shape
        dip, dop = _round_up(di, LANE), _round_up(do, LANE)
        # Zero padding is exact: padded lanes stay 0 through bias/ReLU and padded
        # weight rows contribute nothing to the next layer.
        w_pad = jnp.pad(w, ((0, dip - di), (0, dop - do))).astype(matmul_dtype)
        b_pad = jnp.pad(b.reshape(1, -1).astype(jnp.float32), ((0, 0), (0, dop - do)))
        flat_wb += [w_pad, b_pad]

    kernel = functools.partial(_fused_mlp_kernel, num_linear=num_linear)

    # Advisory cost estimate so XLA schedules around this tiny, latency-bound call.
    flops = 2 * B * sum(w.shape[0] * w.shape[1] for w, _ in params)
    param_bytes = sum(int(a.size) * a.dtype.itemsize for a in flat_wb)
    bytes_accessed = int(x.size * x.dtype.itemsize
                         + B * out_p * x.dtype.itemsize + param_bytes)
    cost = pl.CostEstimate(flops=flops, transcendentals=0, bytes_accessed=bytes_accessed)

    max_feat_p = max([din_p, out_p] + [a.shape[-1] for a in flat_wb])

    def _vmem_limit(bb):
        # resident weights + (double-buffered) activation tiles + f32 intermediates,
        # with 2x headroom; clamp to [32 MiB default, 64 MiB] so it is always valid
        # on v7x's smaller (64 MiB physical) VMEM.
        resident = param_bytes
        resident += 2 * bb * (din_p + out_p) * x.dtype.itemsize   # in/out tiles
        resident += 2 * bb * max_feat_p * 4                       # f32 intermediates
        return int(min(max(2 * resident, 32 * 1024 * 1024), 64 * 1024 * 1024))

    if B <= max_batch_block:
        # Single fused invocation, no grid: everything resident in VMEM, one lane-dense
        # HBM store of the (padded) output only.
        vmem = pl.BlockSpec(memory_space=pltpu.MemorySpace.VMEM)
        y_p = pl.pallas_call(
            kernel,
            out_shape=jax.ShapeDtypeStruct((B, out_p), x.dtype),
            in_specs=[vmem] * (1 + 2 * num_linear),
            out_specs=vmem,
            cost_estimate=cost,
            compiler_params=pltpu.CompilerParams(vmem_limit_bytes=_vmem_limit(B)),
        )(x_p, *flat_wb)
        return y_p[:, :out_dim]

    # ---- large-batch streaming path: batch tiles pipelined, weights resident ----
    bb = min(max_batch_block, B)
    # Force an even number of grid steps so the "parallel" batch axis splits evenly
    # across v7x's two TensorCores (no-op on single-TC v5e/v6e); keep tiles
    # sublane (8) aligned.
    num_steps = 2 * pl.cdiv(B, 2 * bb)
    bb = _round_up(pl.cdiv(B, num_steps), 8)
    num_steps = pl.cdiv(B, bb)

    def _call_tiled(single_buffer_weights):
        # Resident weight/bias blocks: constant index_map => loaded once.  With
        # single_buffer_weights they are also single-buffered (no wasted 2x VMEM /
        # dead DMA descriptors).
        wb_mode = pl.Buffered(1) if single_buffer_weights else None
        in_specs = [pl.BlockSpec((bb, din_p), lambda i: (i, 0))]
        for j in range(num_linear):
            w_pad, b_pad = flat_wb[2 * j], flat_wb[2 * j + 1]
            in_specs.append(pl.BlockSpec(w_pad.shape, lambda i: (0, 0),
                                         pipeline_mode=wb_mode))
            in_specs.append(pl.BlockSpec(b_pad.shape, lambda i: (0, 0),
                                         pipeline_mode=wb_mode))
        y_p = pl.pallas_call(
            kernel,
            out_shape=jax.ShapeDtypeStruct((B, out_p), x.dtype),
            grid=(num_steps,),
            in_specs=in_specs,
            out_specs=pl.BlockSpec((bb, out_p), lambda i: (i, 0)),
            cost_estimate=cost,
            compiler_params=pltpu.CompilerParams(
                dimension_semantics=("parallel",),   # shard batch tiles across TCs (v7x)
                vmem_limit_bytes=_vmem_limit(bb),
            ),
        )(x_p, *flat_wb)
        return y_p[:, :out_dim]

    try:
        return _call_tiled(single_buffer_weights=True)
    except Exception:
        # Graceful fallback for jax versions whose pallas_call pipeline does not
        # accept BlockSpec.pipeline_mode; semantics are identical.
        return _call_tiled(single_buffer_weights=False)


def init_params(key, input_size, hidden_size, output_size, num_layers):
    """Deterministic params matching the PyTorch module layer structure:
    Linear(in, hid) + ReLU, (num_layers-1) x [Linear(hid, hid) + ReLU], Linear(hid, out).
    """
    dims = [input_size] + [hidden_size] * num_layers + [output_size]
    params = []
    for i, (din, dout) in enumerate(zip(dims[:-1], dims[1:])):
        kw, kb, key = jax.random.split(jax.random.fold_in(key, i), 3)
        bound = 1.0 / jnp.sqrt(jnp.float32(din))   # nn.Linear default-ish init
        w = jax.random.uniform(kw, (din, dout), jnp.float32, -bound, bound)
        b = jax.random.uniform(kb, (dout,), jnp.float32, -bound, bound)
        params.append((w, b))
    return params


if __name__ == "__main__":
    # Small shapes consistent with the module.
    batch = 8
    input_size = 32
    hidden_size = 64
    output_size = 16
    num_layers = 3   # -> Linear(32,64)+ReLU, 2x [Linear(64,64)+ReLU], Linear(64,16)

    key = jax.random.PRNGKey(0)
    kx, kp, kx2 = jax.random.split(key, 3)
    x = jax.random.normal(kx, (batch, input_size), jnp.float32)
    params = init_params(kp, input_size, hidden_size, output_size, num_layers)

    def reference(xs):
        # Pure-JAX reference mirroring the kernel's bf16-operand / f32-accumulate math.
        h = xs
        for i, (w, b) in enumerate(params):
            h = jnp.dot(h.astype(jnp.bfloat16), w.astype(jnp.bfloat16),
                        preferred_element_type=jnp.float32) + b
            if i < len(params) - 1:
                h = jnp.maximum(h, 0.0)
        return h

    # 1) Small-batch fused path (no grid, everything resident in VMEM).
    y = example_model_forward(x, params)
    jax.block_until_ready(y)
    assert y.shape == (batch, output_size)
    assert jnp.allclose(y, reference(x), atol=1e-2, rtol=1e-2)

    # 2) Batch-tiled streaming path (weights resident, batch tiles pipelined).
    x_big = jax.random.normal(kx2, (256, input_size), jnp.float32)
    y_big = example_model_forward(x_big, params, max_batch_block=128)
    jax.block_until_ready(y_big)
    assert y_big.shape == (256, output_size)
    assert jnp.allclose(y_big, reference(x_big), atol=1e-2, rtol=1e-2)

    print("KERNEL_OK")
</pallas_src>

<mosaic_0001>
module attributes {stable_mosaic.version = 11 : i64} {
  func.func @_fused_mlp_kernel(%arg0: memref<8x128xf32, #tpu.memory_space<vmem>>, %arg1: memref<128x128xbf16, #tpu.memory_space<vmem>>, %arg2: memref<1x128xf32, #tpu.memory_space<vmem>>, %arg3: memref<128x128xbf16, #tpu.memory_space<vmem>>, %arg4: memref<1x128xf32, #tpu.memory_space<vmem>>, %arg5: memref<128x128xbf16, #tpu.memory_space<vmem>>, %arg6: memref<1x128xf32, #tpu.memory_space<vmem>>, %arg7: memref<128x128xbf16, #tpu.memory_space<vmem>>, %arg8: memref<1x128xf32, #tpu.memory_space<vmem>>, %arg9: memref<8x128xf32, #tpu.memory_space<vmem>>) attributes {dimension_semantics = [], scalar_prefetch = 0 : i64, scratch_operands = 0 : i64, tpu.core_type = #tpu.core_type<tc>} {
    %c0 = arith.constant 0 : index
    %c0_0 = arith.constant 0 : index
    %0 = vector.load %arg0[%c0, %c0_0] : memref<8x128xf32, #tpu.memory_space<vmem>>, vector<8x128xf32>
    %c0_1 = arith.constant 0 : index
    %c0_2 = arith.constant 0 : index
    %1 = vector.load %arg1[%c0_1, %c0_2] : memref<128x128xbf16, #tpu.memory_space<vmem>>, vector<128x128xbf16>
    %c0_3 = arith.constant 0 : index
    %c0_4 = arith.constant 0 : index
    %2 = vector.load %arg2[%c0_3, %c0_4] : memref<1x128xf32, #tpu.memory_space<vmem>>, vector<1x128xf32>
    %3 = arith.truncf %0 : vector<8x128xf32> to vector<8x128xbf16>
    %cst = arith.constant dense<0.000000e+00> : vector<8x128xf32>
    %4 = tpu.matmul %3, %1, %cst {dimension_numbers = #tpu.dot_dimension_numbers<[1], [0], [0], [1], [0, 0, 1, 1], [], []>} : vector<8x128xbf16>, vector<128x128xbf16>, vector<8x128xf32> -> vector<8x128xf32>
    %5 = vector.broadcast %2 : vector<1x128xf32> to vector<8x128xf32>
    %6 = arith.addf %4, %5 : vector<8x128xf32>
    %cst_5 = arith.constant 0.000000e+00 : f32
    %7 = vector.broadcast %cst_5 : f32 to vector<8x128xf32>
    %8 = arith.maximumf %6, %7 : vector<8x128xf32>
    %c0_6 = arith.constant 0 : index
    %c0_7 = arith.constant 0 : index
    %9 = vector.load %arg3[%c0_6, %c0_7] : memref<128x128xbf16, #tpu.memory_space<vmem>>, vector<128x128xbf16>
    %c0_8 = arith.constant 0 : index
    %c0_9 = arith.constant 0 : index
    %10 = vector.load %arg4[%c0_8, %c0_9] : memref<1x128xf32, #tpu.memory_space<vmem>>, vector<1x128xf32>
    %11 = arith.truncf %8 : vector<8x128xf32> to vector<8x128xbf16>
    %cst_10 = arith.constant dense<0.000000e+00> : vector<8x128xf32>
    %12 = tpu.matmul %11, %9, %cst_10 {dimension_numbers = #tpu.dot_dimension_numbers<[1], [0], [0], [1], [0, 0, 1, 1], [], []>} : vector<8x128xbf16>, vector<128x128xbf16>, vector<8x128xf32> -> vector<8x128xf32>
    %13 = vector.broadcast %10 : vector<1x128xf32> to vector<8x128xf32>
    %14 = arith.addf %12, %13 : vector<8x128xf32>
    %cst_11 = arith.constant 0.000000e+00 : f32
    %15 = vector.broadcast %cst_11 : f32 to vector<8x128xf32>
    %16 = arith.maximumf %14, %15 : vector<8x128xf32>
    %c0_12 = arith.constant 0 : index
    %c0_13 = arith.constant 0 : index
    %17 = vector.load %arg5[%c0_12, %c0_13] : memref<128x128xbf16, #tpu.memory_space<vmem>>, vector<128x128xbf16>
    %c0_14 = arith.constant 0 : index
    %c0_15 = arith.constant 0 : index
    %18 = vector.load %arg6[%c0_14, %c0_15] : memref<1x128xf32, #tpu.memory_space<vmem>>, vector<1x128xf32>
    %19 = arith.truncf %16 : vector<8x128xf32> to vector<8x128xbf16>
    %cst_16 = arith.constant dense<0.000000e+00> : vector<8x128xf32>
    %20 = tpu.matmul %19, %17, %cst_16 {dimension_numbers = #tpu.dot_dimension_numbers<[1], [0], [0], [1], [0, 0, 1, 1], [], []>} : vector<8x128xbf16>, vector<128x128xbf16>, vector<8x128xf32> -> vector<8x128xf32>
    %21 = vector.broadcast %18 : vector<1x128xf32> to vector<8x128xf32>
    %22 = arith.addf %20, %21 : vector<8x128xf32>
    %cst_17 = arith.constant 0.000000e+00 : f32
    %23 = vector.broadcast %cst_17 : f32 to vector<8x128xf32>
    %24 = arith.maximumf %22, %23 : vector<8x128xf32>
    %c0_18 = arith.constant 0 : index
    %c0_19 = arith.constant 0 : index
    %25 = vector.load %arg7[%c0_18, %c0_19] : memref<128x128xbf16, #tpu.memory_space<vmem>>, vector<128x128xbf16>
    %c0_20 = arith.constant 0 : index
    %c0_21 = arith.constant 0 : index
    %26 = vector.load %arg8[%c0_20, %c0_21] : memref<1x128xf32, #tpu.memory_space<vmem>>, vector<1x128xf32>
    %27 = arith.truncf %24 : vector<8x128xf32> to vector<8x128xbf16>
    %cst_22 = arith.constant dense<0.000000e+00> : vector<8x128xf32>
    %28 = tpu.matmul %27, %25, %cst_22 {dimension_numbers = #tpu.dot_dimension_numbers<[1], [0], [0], [1], [0, 0, 1, 1], [], []>} : vector<8x128xbf16>, vector<128x128xbf16>, vector<8x128xf32> -> vector<8x128xf32>
    %29 = vector.broadcast %26 : vector<1x128xf32> to vector<8x128xf32>
    %30 = arith.addf %28, %29 : vector<8x128xf32>
    %c0_23 = arith.constant 0 : index
    %c0_24 = arith.constant 0 : index
    %31 = vector.load %arg9[%c0_23, %c0_24] : memref<8x128xf32, #tpu.memory_space<vmem>>, vector<8x128xf32>
    tpu.vector_store %arg9[%c0_23, %c0_24], %30 {strides = array<i32>} : memref<8x128xf32, #tpu.memory_space<vmem>>, vector<8x128xf32>,
    return
  }
}

</mosaic_0001>

<bundles_post_ra>
// kernel: tpu_custom_call.1
= control target key start
LH: loop header
LB: loop body
LE: loop exit
PB: predicated region body
PF: predicated region fallthrough
CT: control target
= control target key end

     0   :  { %14 = vsyncpa [#allocation3], 0  ;;  %s873_s0 = inlined_call_operand.hbm [shape: f32[8,128], index: 0, kind: input, shape index: {}]   ;;  %s874_s1 = inlined_call_operand.hbm [shape: bf16[128,128], index: 1, kind: input, shape index: {}]   ;;  %s875_s2 = inlined_call_operand.vmem [shape: f32[1,128], index: 2, kind: input, shape index: {}]   ;;  %s876_s3 = inlined_call_operand.hbm [shape: bf16[128,128], index: 3, kind: input, shape index: {}]   ;;  %s877_s4 = inlined_call_operand.vmem [shape: f32[1,128], index: 4, kind: input, shape index: {}]   ;;  %s878_s5 = inlined_call_operand.hbm [shape: bf16[128,128], index: 5, kind: input, shape index: {}]   ;;  %s879_s6 = inlined_call_operand.vmem [shape: f32[1,128], index: 6, kind: input, shape index: {}]   ;;  %s880_s7 = inlined_call_operand.hbm [shape: bf16[128,128], index: 7, kind: input, shape index: {}]   ;;  %s881_s8 = inlined_call_operand.vmem [shape: f32[1,128], index: 8, kind: input, shape index: {}]   ;;  %s882_s9 = inlined_call_operand.hbm [shape: f32[8,128], index: 9, kind: output, shape index: {}]  }
   0x1   :  { %15 = vsyncpa [#allocation6], 0 }
   0x2   :  { %16 = vsyncpa [#allocation9], 0  ;;  %s33_s11 = sshll.u32 %s874_s1, 4  ;;  %s34_s11 = int_to_ptr.hbm [resolvable:$true] %s33_s11 }
   0x3   :  { %17 = vsyncpa [#allocation4], 0  ;;  %s785_s12 = smov [#allocation5]   ;;  %s63_s16 = sshll.u32 %s878_s5, 4  ;;  %s64_s16 = int_to_ptr.hbm [resolvable:$true] %s63_s16 }
   0x4   :  { %s35_s13 = sshll.u32 %s785_s12, 4  ;;  %s786_s17 = smov 64   ;;  %s36_s13 = int_to_ptr.vmem [resolvable:$true] %s35_s13 }
   0x5   :  { %s787_s18 = smov 4   ;;  %s788_s19 = smov [#allocation8]  }
   0x6   :  { %41 = dma.hbm_to_vmem [thread:$0]  %s34_s11, 1024, %s36_s13, [#allocation6], %s786_s17, %s786_s17, %s787_s18  }
   0x7   :  { %s65_s20 = sshll.u32 %s788_s19, 4  ;;  %s23_s23 = sshll.u32 %s873_s0, 4  ;;  %s66_s20 = int_to_ptr.vmem [resolvable:$true] %s65_s20  ;;  %s24_s23 = int_to_ptr.hbm [resolvable:$true] %s23_s23 }
   0x8   :  { %71 = dma.hbm_to_vmem [thread:$0]  %s64_s16, 1024, %s66_s20, [#allocation9], %s786_s17, %s786_s17, %s787_s18  }
   0x9   :  { %s48_s25 = sshll.u32 %s876_s3, 4  ;;  %s789_s26 = smov [#allocation2]   ;;  %s49_s25 = int_to_ptr.hbm [resolvable:$true] %s48_s25 }
   0xa   :  { %s25_s27 = sshll.u32 %s789_s26, 4  ;;  %s790_s5 = smov [#allocation7]   ;;  %s26_s27 = int_to_ptr.vmem [resolvable:$true] %s25_s27 }
   0xb   :  { %28 = dma.hbm_to_vmem [thread:$0]  %s24_s23, 128, %s26_s27, [#allocation3]  }
   0xc   :  { %s50_s28 = sshll.u32 %s790_s5, 4  ;;  %s78_s10 = sshll.u32 %s880_s7, 4  ;;  %s51_s28 = int_to_ptr.vmem [resolvable:$true] %s50_s28  ;;  %s79_s10 = int_to_ptr.hbm [resolvable:$true] %s78_s10 }
   0xd   :  { %56 = dma.hbm_to_vmem [thread:$0]  %s49_s25, 1024, %s51_s28, [#allocation6], %s786_s17, %s786_s17, %s787_s18  }
   0xe   :  { %s791_s0 = smov [#allocation10]  }
   0xf   :  { %s80_s11 = sshll.u32 %s791_s0, 4  ;;  %s81_s11 = int_to_ptr.vmem [resolvable:$true] %s80_s11 }
  0x10   :  { %86 = dma.hbm_to_vmem [thread:$0]  %s79_s10, 1024, %s81_s11, [#allocation9], %s786_s17, %s786_s17, %s787_s18  }
  0x11   :  { %777 = dma.done.wait [#allocation3], 128  }
  0x12   :  { %778 = vsyncadd [#allocation3], 4294967168 }
  0x13   :  { %779 = dma.done.wait [#allocation6], 2048  }
  0x14   :  { %780 = vsyncadd [#allocation6], 4294965248 }
  0x15   :  { %781 = dma.done.wait [#allocation9], 2048  }
  0x16   :  { %782 = vsyncadd [#allocation9], 4294965248  ;;  %v596_v0 = vld [vmem:[#allocation5 + $0x38] sm:$0xff]  ;;  %v595_v1 = vld [vmem:[#allocation5 + $0x30] sm:$0xff]  ;;  %s792_s16 = smov [#allocation11]   ;;  %s449_s20 = sshll.u32 %s882_s9, 4  ;;  %s450_s20 = int_to_ptr.hbm [resolvable:$true] %s449_s20 }
  0x17   :  { %179 = vmatpush.bf16.msra.mxu0 %v596_v0  ;;  %v604_v2 = vld [vmem:[#allocation7 + $0x38] sm:$0xff]  ;;  %v603_v3 = vld [vmem:[#allocation7 + $0x30] sm:$0xff]  ;;  %v594_v4 = vld [vmem:[#allocation5 + $0x28] sm:$0xff]  ;;  %s447_s17 = sshll.u32 %s792_s16, 4  ;;  %s448_s17 = int_to_ptr.vmem [resolvable:$true] %s447_s17 }
  0x18   :  { %262 = vmatpush.bf16.msra.mxu1 %v604_v2  ;;  %v602_v5 = vld [vmem:[#allocation7 + $0x28] sm:$0xff]  ;;  %v593_v6 = vld [vmem:[#allocation5 + $0x20] sm:$0xff]  ;;  %v592_v8 = vld [vmem:[#allocation5 + $0x18] sm:$0xff] }
  0x19   :  { %v601_v7 = vld [vmem:[#allocation7 + $0x20] sm:$0xff]  ;;  %v600_v9 = vld [vmem:[#allocation7 + $0x18] sm:$0xff]  ;;  %v591_v10 = vld [vmem:[#allocation5 + $0x10] sm:$0xff] }
  0x1a   :  { %v599_v11 = vld [vmem:[#allocation7 + $0x10] sm:$0xff]  ;;  %v590_v12 = vld [vmem:[#allocation5 + $0x8] sm:$0xff]  ;;  %v589_v13 = vld [vmem:[#allocation5] sm:$0xff] }
  0x1b   :  { %180 = vmatpush.bf16.msra.mxu0 %v595_v1  ;;  %v109_v14 = vld [vmem:[#allocation2] sm:$0xff]  ;;  %v598_v16 = vld [vmem:[#allocation7 + $0x8] sm:$0xff]  ;;  %v597_v17 = vld [vmem:[#allocation7] sm:$0xff] }
  0x1c   :  { %263 = vmatpush.bf16.msra.mxu1 %v603_v3  ;;  %v127_v15 = vpack.c.bf16 %v109_v14, %v109_v14  ;;  %v612_v18 = vld [vmem:[#allocation8 + $0x38] sm:$0xff]  ;;  %v611_v19 = vld [vmem:[#allocation8 + $0x30] sm:$0xff]  ;;  %v610_v20 = vld [vmem:[#allocation8 + $0x28] sm:$0xff] }
  0x1d   :  { %345 = vmatpush.bf16.msra.mxu2 %v612_v18  ;;  %v609_v21 = vld [vmem:[#allocation8 + $0x20] sm:$0xff]  ;;  %v608_v22 = vld [vmem:[#allocation8 + $0x18] sm:$0xff]  ;;  %v607_v23 = vld [vmem:[#allocation8 + $0x10] sm:$0xff] }
  0x1e   :  { %v629_v24 = vld [vmem:[%s875_s2] ss:$0 sm:$0xff]  ;;  %v606_v30 = vld [vmem:[#allocation8 + $0x8] sm:$0xff]  ;;  %v605_v31 = vld [vmem:[#allocation8] sm:$0xff] }
  0x1f   :  { %181 = vmatpush.bf16.msra.mxu0 %v594_v4  ;;  %v620_v32 = vld [vmem:[#allocation10 + $0x38] sm:$0xff]  ;;  %v619_v33 = vld [vmem:[#allocation10 + $0x30] sm:$0xff]  ;;  %v618_v34 = vld [vmem:[#allocation10 + $0x28] sm:$0xff] }
  0x20   :  { %264 = vmatpush.bf16.msra.mxu1 %v602_v5  ;;  %428 = vmatpush.bf16.msra.mxu3 %v620_v32  ;;  %v617_v35 = vld [vmem:[#allocation10 + $0x20] sm:$0xff]  ;;  %v616_v36 = vld [vmem:[#allocation10 + $0x18] sm:$0xff]  ;;  %v615_v37 = vld [vmem:[#allocation10 + $0x10] sm:$0xff] }
  0x21   :  { %346 = vmatpush.bf16.msra.mxu2 %v611_v19  ;;  %v630_v38 = vld [vmem:[%s877_s4] ss:$0 sm:$0xff]  ;;  %v614_v44 = vld [vmem:[#allocation10 + $0x8] sm:$0xff]  ;;  %v613_v45 = vld [vmem:[#allocation10] sm:$0xff] }
  0x22   :  { %v631_v46 = vld [vmem:[%s879_s6] ss:$0 sm:$0xff] }
  0x23   :  { %182 = vmatpush.bf16.msra.mxu0 %v593_v6  ;;  %v632_v52 = vld [vmem:[%s881_s8] ss:$0 sm:$0xff] }
  0x24   :  { %265 = vmatpush.bf16.msra.mxu1 %v601_v7  ;;  %429 = vmatpush.bf16.msra.mxu3 %v619_v33 }
  0x25   :  { %347 = vmatpush.bf16.msra.mxu2 %v610_v20 }
  0x27   :  { %183 = vmatpush.bf16.msra.mxu0 %v592_v8 }
  0x28   :  { %266 = vmatpush.bf16.msra.mxu1 %v600_v9  ;;  %430 = vmatpush.bf16.msra.mxu3 %v618_v34 }
  0x29   :  { %348 = vmatpush.bf16.msra.mxu2 %v609_v21 }
  0x2b   :  { %184 = vmatpush.bf16.msra.mxu0 %v591_v10 }
  0x2c   :  { %267 = vmatpush.bf16.msra.mxu1 %v599_v11  ;;  %431 = vmatpush.bf16.msra.mxu3 %v617_v35 }
  0x2d   :  { %349 = vmatpush.bf16.msra.mxu2 %v608_v22 }
  0x2f   :  { %185 = vmatpush.bf16.msra.mxu0 %v590_v12 }
  0x30   :  { %268 = vmatpush.bf16.msra.mxu1 %v598_v16  ;;  %432 = vmatpush.bf16.msra.mxu3 %v616_v36 }
  0x31   :  { %350 = vmatpush.bf16.msra.mxu2 %v607_v23 }
  0x33   :  { %186 = vmatpush.bf16.msra.mxu0 %v589_v13 }
  0x34   :  { %269 = vmatpush.bf16.msra.mxu1 %v597_v17  ;;  %433 = vmatpush.bf16.msra.mxu3 %v615_v37 }
  0x35   :  { %351 = vmatpush.bf16.msra.mxu2 %v606_v30 }
  0x36   :  { %187 = vmatmul.bf16.vlgmr.msra.gmra.mxu0 %v127_v15 }
  0x38   :  { %434 = vmatpush.bf16.msra.mxu3 %v614_v44 }
  0x39   :  { %352 = vmatpush.bf16.msra.mxu2 %v605_v31 }
  0x3c   :  { %435 = vmatpush.bf16.msra.mxu3 %v613_v45 }
  0xb3   :  { %v188_v25 = vpop.f32.mrf.mxu0 }
  0xb4   :  { %v189_v26 = vadd.f32 %v629_v24, %v188_v25 }
  0xb6   :  { %v192_v27 = vmax.f32 %v189_v26, 0.0 }
  0xb8   :  { %v210_v28 = vpack.c.bf16 %v192_v27, %v192_v27 }
  0xba   :  { %270 = vmatmul.bf16.vlgmr.msra.gmra.mxu1 %v210_v28 }
  0xbb   :  { %v190_v29 = vpop.f32.mrf.mxu0 }
 0x137   :  { %v271_v39 = vpop.f32.mrf.mxu1 }
 0x138   :  { %v272_v40 = vadd.f32 %v630_v38, %v271_v39 }
 0x13a   :  { %v275_v41 = vmax.f32 %v272_v40, 0.0 }
 0x13c   :  { %v293_v42 = vpack.c.bf16 %v275_v41, %v275_v41 }
 0x13e   :  { %353 = vmatmul.bf16.vlgmr.msra.gmra.mxu2 %v293_v42 }
 0x13f   :  { %v273_v43 = vpop.f32.mrf.mxu1 }
 0x1c1   :  { %v354_v47 = vpop.f32.mrf.mxu2 }
 0x1c2   :  { %v355_v48 = vadd.f32 %v631_v46, %v354_v47 }
 0x1c4   :  { %v358_v49 = vmax.f32 %v355_v48, 0.0 }
 0x1c6   :  { %v376_v50 = vpack.c.bf16 %v358_v49, %v358_v49 }
 0x1c8   :  { %436 = vmatmul.bf16.vlgmr.msra.gmra.mxu3 %v376_v50 }
 0x1c9   :  { %v356_v51 = vpop.f32.mrf.mxu2 }
 0x24b   :  { %v437_v53 = vpop.f32.mrf.mxu3 }
 0x24c   :  { %v438_v54 = vadd.f32 %v632_v52, %v437_v53 }
 0x24e   :  { %441 = vst [vmem:[#allocation11] sm:$0xff] %v438_v54 }
 0x24f   :  { %452 = dma.vmem_to_hbm [thread:$0]  %s448_s17, 128, %s450_s20, [#allocation4]  }
 0x253   :  { %v439_v55 = vpop.f32.mrf.mxu3 }
 0x254   :  { %783 = dma.done.wait [#allocation4], 128  }
 0x255   :  { %784 = vsyncadd [#allocation4], 4294967168 }
 0x256   :  { %457 = vsyncpa [#allocation3], 1 }
 0x257   :  { %458 = vsyncpa [#allocation6], 1 }
 0x258   :  { %459 = vsyncpa [#allocation9], 1 }
 0x259   :  { %460 = vsyncpa [#allocation4], 1 }

</bundles_post_ra>
